<compile_context>
chip_gen: v7x
topology: tpu7x:2x2x1
jax: 0.10.0
libtpu: 0.0.40
codegen_flags: <defaults>
</compile_context>

<pallas_src>
import functools

import jax
import jax.numpy as jnp
from jax.experimental import pallas as pl
from jax.experimental.pallas import tpu as pltpu


def _se_kernel(x_ref, w1_ref, w2_ref, o_ref, *, spatial_axis):
    """One grid step: Bt batch elements, full channel & spatial extent.

    x_ref / o_ref: (Bt, C, HW) if spatial_axis == 2, else (Bt, HW, C).
    w1_ref: (C, C_red)   (pre-transposed so y @ w1 == y @ W1^T)
    w2_ref: (C_red, C)
    """
    inv_hw = 1.0 / x_ref.shape[spatial_axis]

    # 1) global average pool; accumulate in f32 without keeping a full-tile
    #    f32 copy live across the FC dependency chain.
    y = jnp.sum(x_ref[...], axis=spatial_axis, dtype=jnp.float32) * inv_hw  # (Bt, C)

    # 2) squeeze FC + ReLU, 3) excite FC + sigmoid (batched over Bt rows).
    h = jnp.maximum(jnp.dot(y, w1_ref[...], preferred_element_type=jnp.float32), 0.0)
    s = jax.nn.sigmoid(jnp.dot(h, w2_ref[...], preferred_element_type=jnp.float32))  # (Bt, C)

    # 4) rescale: re-read x from VMEM (cheap, keeps vreg pressure low) and
    #    broadcast the per-channel scale over the spatial axis.
    if spatial_axis == 2:
        scale = s[:, :, None]
    else:
        scale = s[:, None, :]
    o_ref[...] = (x_ref[...] * scale.astype(x_ref.dtype)).astype(o_ref.dtype)


def _pick_batch_tile(B, inner_elems, itemsize, block_budget_bytes):
    """Largest divisor of B whose block fits the budget; keep >=2 grid steps
    (megacore sharding on v7x) when B allows."""
    per_batch = max(1, inner_elems * itemsize)
    max_bt = max(1, block_budget_bytes // per_batch)
    if B >= 2:
        max_bt = min(max_bt, B // 2)
    max_bt = max(1, min(max_bt, B))
    bt = 1
    for d in range(1, max_bt + 1):
        if B % d == 0:
            bt = d
    return bt


def se_layer(x, w1, w2, *, block_budget_bytes=4 << 20, vmem_limit_bytes=32 << 20):
    """SE layer forward.

    Args:
      x:  (B, C, H, W), NCHW (PyTorch convention).
      w1: (C_red, C)  first Linear weight (PyTorch layout: out x in, no bias).
      w2: (C, C_red)  second Linear weight.
    Returns:
      (B, C, H, W), same dtype as x.
    """
    B, C, H, W = x.shape
    HW = H * W
    c_red = w1.shape[0]

    # Layout choice: put whichever of {HW, C} is a multiple of 128 on lanes so
    # the dominant rescale stores are lane-dense.
    channels_last = (HW % 128 != 0) and (C % 128 == 0)
    if channels_last:
        x_flat = x.reshape(B, C, HW).transpose(0, 2, 1)      # (B, HW, C)
        inner = (HW, C)
        spatial_axis = 1
    else:
        x_flat = x.reshape(B, C, HW)                         # (B, C, HW)
        inner = (C, HW)
        spatial_axis = 2

    bt = _pick_batch_tile(B, C * HW, x.dtype.itemsize, block_budget_bytes)
    grid = (B // bt,)

    # Pre-transpose weights so the kernel does plain row-major y @ W.
    w1_t = jnp.transpose(w1)                                 # (C, C_red)
    w2_t = jnp.transpose(w2)                                 # (C_red, C)

    itemsize = jnp.dtype(x.dtype).itemsize
    cost = pl.CostEstimate(
        flops=2 * B * C * HW + 4 * B * C * c_red,
        transcendentals=B * C,
        bytes_accessed=2 * B * C * HW * itemsize
        + (w1.size + w2.size) * jnp.dtype(w1.dtype).itemsize,
    )

    kernel = functools.partial(_se_kernel, spatial_axis=spatial_axis)

    out_flat = pl.pallas_call(
        kernel,
        out_shape=jax.ShapeDtypeStruct((B,) + inner, x.dtype),
        grid_spec=pltpu.PrefetchScalarGridSpec(
            num_scalar_prefetch=0,
            grid=grid,
            in_specs=[
                pl.BlockSpec((bt,) + inner, lambda b: (b, 0, 0)),
                pl.BlockSpec((C, c_red), lambda b: (0, 0)),
                pl.BlockSpec((c_red, C), lambda b: (0, 0)),
            ],
            out_specs=pl.BlockSpec((bt,) + inner, lambda b: (b, 0, 0)),
        ),
        compiler_params=pltpu.CompilerParams(
            dimension_semantics=("parallel",),
            vmem_limit_bytes=vmem_limit_bytes,
        ),
        cost_estimate=cost,
    )(x_flat, w1_t, w2_t)

    if channels_last:
        return out_flat.transpose(0, 2, 1).reshape(B, C, H, W)
    return out_flat.reshape(B, C, H, W)


def se_layer_ref(x, w1, w2):
    """Pure-JAX reference matching the PyTorch module."""
    y = jnp.mean(x, axis=(2, 3))                 # AdaptiveAvgPool2d(1)
    h = jnp.maximum(y @ w1.T, 0.0)               # Linear(C, C//r, bias=False) + ReLU
    s = jax.nn.sigmoid(h @ w2.T)                 # Linear(C//r, C, bias=False) + Sigmoid
    return x * s[:, :, None, None]


def _run_config(key, B, C, H, W, reduction):
    c_red = max(1, C // reduction)
    kx, k1, k2 = jax.random.split(key, 3)
    x = jax.random.normal(kx, (B, C, H, W), dtype=jnp.float32)
    w1 = 0.1 * jax.random.normal(k1, (c_red, C), dtype=jnp.float32)
    w2 = 0.1 * jax.random.normal(k2, (C, c_red), dtype=jnp.float32)

    out = jax.block_until_ready(se_layer(x, w1, w2))
    ref = se_layer_ref(x, w1, w2)
    assert out.shape == (B, C, H, W)
    assert jnp.allclose(out, ref, atol=2e-5, rtol=2e-5), (
        f"mismatch vs reference for config B={B} C={C} H={H} W={W}")


if __name__ == "__main__":
    key = jax.random.PRNGKey(0)
    k_a, k_b = jax.random.split(key, 2)

    # Config A: HW multiple of 128 -> (B, C, HW) layout, Bt=2 per grid step.
    _run_config(k_a, B=4, C=64, H=16, W=16, reduction=16)

    # Config B: small spatial (7x7), C multiple of 128 -> lane-dense (B, HW, C)
    # layout path, Bt=2 per grid step.
    _run_config(k_b, B=4, C=128, H=7, W=7, reduction=16)

    print("KERNEL_OK")
</pallas_src>

<mosaic_0001>
module attributes {stable_mosaic.version = 11 : i64} {
  func.func @_se_kernel(%arg0: i32, %arg1: memref<2x64x256xf32, #tpu.memory_space<vmem>>, %arg2: memref<64x4xf32, #tpu.memory_space<vmem>>, %arg3: memref<4x64xf32, #tpu.memory_space<vmem>>, %arg4: memref<2x64x256xf32, #tpu.memory_space<vmem>>) attributes {dimension_semantics = [#tpu.dimension_semantics<parallel>], iteration_bounds = array<i64: 2>, scalar_prefetch = 0 : i64, scratch_operands = 0 : i64, tpu.core_type = #tpu.core_type<tc>, window_params = [{transform_indices = @transform_0, window_bounds = array<i64: 2, 64, 256>}, {pipeline_mode = #tpu.pipeline_mode<synchronous>, transform_indices = @transform_1, window_bounds = array<i64: 64, 4>}, {pipeline_mode = #tpu.pipeline_mode<synchronous>, transform_indices = @transform_2, window_bounds = array<i64: 4, 64>}, {transform_indices = @transform_3, window_bounds = array<i64: 2, 64, 256>}]} {
    %c0 = arith.constant 0 : index
    %c0_0 = arith.constant 0 : index
    %c0_1 = arith.constant 0 : index
    %0 = vector.load %arg1[%c0, %c0_0, %c0_1] : memref<2x64x256xf32, #tpu.memory_space<vmem>>, vector<2x64x256xf32>
    %cst = arith.constant dense<0.000000e+00> : vector<2x64xf32>
    %1 = vector.multi_reduction <add>, %0, %cst [2] : vector<2x64x256xf32> to vector<2x64xf32>
    %cst_2 = arith.constant 3.906250e-03 : f32
    %2 = vector.broadcast %cst_2 : f32 to vector<2x64xf32>
    %3 = arith.mulf %1, %2 : vector<2x64xf32>
    %c0_3 = arith.constant 0 : index
    %c0_4 = arith.constant 0 : index
    %4 = vector.load %arg2[%c0_3, %c0_4] : memref<64x4xf32, #tpu.memory_space<vmem>>, vector<64x4xf32>
    %cst_5 = arith.constant dense<0.000000e+00> : vector<2x4xf32>
    %5 = tpu.matmul %3, %4, %cst_5 {dimension_numbers = #tpu.dot_dimension_numbers<[1], [0], [0], [1], [0, 0, 1, 1], [], []>} : vector<2x64xf32>, vector<64x4xf32>, vector<2x4xf32> -> vector<2x4xf32>
    %cst_6 = arith.constant 0.000000e+00 : f32
    %6 = vector.broadcast %cst_6 : f32 to vector<2x4xf32>
    %7 = arith.maximumf %5, %6 : vector<2x4xf32>
    %c0_7 = arith.constant 0 : index
    %c0_8 = arith.constant 0 : index
    %8 = vector.load %arg3[%c0_7, %c0_8] : memref<4x64xf32, #tpu.memory_space<vmem>>, vector<4x64xf32>
    %cst_9 = arith.constant dense<0.000000e+00> : vector<2x64xf32>
    %9 = tpu.matmul %7, %8, %cst_9 {dimension_numbers = #tpu.dot_dimension_numbers<[1], [0], [0], [1], [0, 0, 1, 1], [], []>} : vector<2x4xf32>, vector<4x64xf32>, vector<2x64xf32> -> vector<2x64xf32>
    %10 = arith.negf %9 : vector<2x64xf32>
    %11 = math.exp %10 : vector<2x64xf32>
    %cst_10 = arith.constant 1.000000e+00 : f32
    %12 = vector.broadcast %cst_10 : f32 to vector<2x64xf32>
    %13 = arith.addf %12, %11 : vector<2x64xf32>
    %14 = arith.divf %12, %13 : vector<2x64xf32>
    %15 = vector.shape_cast %14 : vector<2x64xf32> to vector<2x64x1xf32>
    %c0_11 = arith.constant 0 : index
    %c0_12 = arith.constant 0 : index
    %c0_13 = arith.constant 0 : index
    %16 = vector.load %arg1[%c0_11, %c0_12, %c0_13] : memref<2x64x256xf32, #tpu.memory_space<vmem>>, vector<2x64x256xf32>
    %17 = vector.broadcast %15 : vector<2x64x1xf32> to vector<2x64x256xf32>
    %18 = arith.mulf %16, %17 : vector<2x64x256xf32>
    %c0_14 = arith.constant 0 : index
    %c0_15 = arith.constant 0 : index
    %c0_16 = arith.constant 0 : index
    %19 = vector.load %arg4[%c0_14, %c0_15, %c0_16] : memref<2x64x256xf32, #tpu.memory_space<vmem>>, vector<2x64x256xf32>
    tpu.vector_store %arg4[%c0_14, %c0_15, %c0_16], %18 {strides = array<i32>} : memref<2x64x256xf32, #tpu.memory_space<vmem>>, vector<2x64x256xf32>,
    return
  }
  func.func @transform_0(%arg0: i32) -> (i32, i32, i32) {
    %c0_i32 = arith.constant 0 : i32
    %c0_i32_0 = arith.constant 0 : i32
    %c0_i32_1 = arith.constant 0 : i32
    return %arg0, %c0_i32, %c0_i32_0 : i32, i32, i32
  }
  func.func @transform_1(%arg0: i32) -> (i32, i32) {
    %c0_i32 = arith.constant 0 : i32
    %c0_i32_0 = arith.constant 0 : i32
    %c0_i32_1 = arith.constant 0 : i32
    return %c0_i32, %c0_i32_0 : i32, i32
  }
  func.func @transform_2(%arg0: i32) -> (i32, i32) {
    %c0_i32 = arith.constant 0 : i32
    %c0_i32_0 = arith.constant 0 : i32
    %c0_i32_1 = arith.constant 0 : i32
    return %c0_i32, %c0_i32_0 : i32, i32
  }
  func.func @transform_3(%arg0: i32) -> (i32, i32, i32) {
    %c0_i32 = arith.constant 0 : i32
    %c0_i32_0 = arith.constant 0 : i32
    %c0_i32_1 = arith.constant 0 : i32
    return %arg0, %c0_i32, %c0_i32_0 : i32, i32, i32
  }
}

</mosaic_0001>

<bundles_post_ra>
// kernel: tpu_custom_call.1
= control target key start
LH: loop header
LB: loop body
LE: loop exit
PB: predicated region body
PF: predicated region fallthrough
CT: control target
= control target key end

     0   :  { %8 = vsyncpa [#allocation3], 0  ;;  %s1458_s0 = inlined_call_operand.hbm [shape: f32[4,64,256], index: 0, kind: input, shape index: {}]   ;;  %s1459_s1 = inlined_call_operand.vmem [shape: f32[64,4], index: 1, kind: input, shape index: {}]   ;;  %s1460_s2 = inlined_call_operand.vmem [shape: f32[4,64], index: 2, kind: input, shape index: {}]   ;;  %s1461_s3 = inlined_call_operand.hbm [shape: f32[4,64,256], index: 3, kind: output, shape index: {}]  }
   0x1   :  { %10 = vsyncpa [#allocation3 + $0x1], 0 }
   0x2   :  { %11 = vsyncpa [#allocation4], 0 }
   0x3   :  { %13 = vsyncpa [#allocation4 + $0x1], 0  ;;  %s1044_s12 = smov 0   ;;  %s1046_s13 = smov 0  }
   0x4   :  { %s1048_s14 = smov 0   ;;  %s1050_s15 = smov 0  }
   0x5 LB: > { %s1065_s16 = sadd.s32 4294967295, %s1013_s15   ;;  %s789_s17 = sadd.s32 4294967294, %s1013_s15   ;;  %s1013_s15 = sphi %s1050_s15, %s1495_s15   ;;  %s1009_s14 = sphi %s1048_s14, %s1494_s14   ;;  %s1005_s13 = sphi %s1046_s13, %s1493_s13   ;;  %s1001_s12 = sphi %s1044_s12, %s1492_s12  }
   0x6   : > { %s1069_s18 = sadd.s32 1, %s1013_s15   ;;  %s26_s19 = sadd.s32 1, %s1009_s14 }
   0x7   : > { %s23_s20 = ssub.s32 %s1013_s15, %s1069_s18  ;;  %p33_p0 = scmp.ne.s32.totalorder %s1009_s14, %s1005_s13 }
   0x8   : > { %p24_p1 = scmp.eq.s32.totalorder %s23_s20, 0  ;;  %p34_p2 = scmp.eq.s32.totalorder %s1013_s15, 0 }
   0x9   : > { %p39_p3 = scmp.ne.s32.totalorder %s1005_s13, %s1001_s12  ;;  %p40_p4 = scmp.eq.s32.totalorder %s1065_s16, 0 }
   0xa   : > { %s1081_s21 = scalar_select %p24_p1, %s1009_s14, %s26_s19  }
   0xb   : > { %p1083_p5 = por %p34_p2, %p33_p0  ;;  %p1087_p6 = por %p40_p4, %p39_p3 }
   0xc   : > { %p105_p7 = scmp.eq.s32.totalorder %s1065_s16, 1  ;;  %p111_p8 = scmp.eq.s32.totalorder %s789_s17, 1 }
   0xd   : > { %p872_p10 = scmp.lt.s32.totalorder %s1013_s15, 2  ;;  %s137_s26 = sand.u32 1, %s1009_s14  }
   0xe   : > { %p1094_p11 = por %p105_p7, %p33_p0  ;;  %p1098_p12 = por %p111_p8, %p39_p3 }
   0xf   : > { %s810_s27 = sshll.u32 %s1013_s15, 12  ;;  %s792_s28 = sshll.u32 %s137_s26, 8 }
  0x10   : > { %s1472_s24 = scalar_select %p1094_p11, 1, 0 }
  0x11   : > { %s1473_s25 = scalar_select %p1098_p12, 1, 0 }
  0x12   : > { %s1107_s4 = scalar_lea.hbm %s1458_s0, %s810_s27  ;;  %s141_s5 = scalar_lea.vmem [#allocation2], %s792_s28 }
  0x13   : > { %s149_s6 = sshll.u32 %s141_s5, 4  ;;  %p1111_p13 = pnand %p872_p10, %p1083_p5  ;;  %s1115_s6 = int_to_ptr.vmem [resolvable:$true] %s149_s6 }
  0x14   : > { %s1117_s8 = scalar_lea.sflag [#allocation3], %s137_s26  ;;  %s917_s9 = scalar_lea.hbm %s1107_s4, 4096 }
  0x15   : > { %p918_p0 = scmp.ne.s32.totalorder %s1107_s4, %s917_s9  ;;  %p919_p1 = pneg %p1111_p13 }
  0x16   : > { %s922_s17 = scalar_lea.hbm %s1458_s0, 8192  ;;  %p923_p4 = scmp.lt.u32.totalorder %s1107_s4, %s1458_s0 }
  0x17   : > { %p920_p2 = pnand %p919_p1, %p918_p0  ;;  %p924_p5 = scmp.lt.u32.totalorder %s922_s17, %s917_s9 }
  0x18   : > { %p926_p8 = scmp.lt.u32.totalorder %s917_s9, %s1107_s4 }
  0x19   : > { %p921_p3 = pneg %p920_p2  ;;  %p925_p7 = por %p924_p5, %p923_p4 }
  0x1b   : > { %p927_p10 = por %p926_p8, %p925_p7 }
  0x1d   : > { %p928_p9 = pnand %p927_p10, %p921_p3 }
  0x1f   : > { %931 = shalt.err (!%p928_p9)
}
  0x20   : > { %s932_s22 = scalar_lea.vmem %s1115_s6, 4096  ;;  %s1015_s26 = smov [#allocation2]  }
  0x21   : > { %p933_p0 = scmp.ne.s32.totalorder %s1115_s6, %s932_s22  ;;  %s937_s27 = sshll.u32 %s1015_s26, 4  ;;  %s938_s27 = int_to_ptr.vmem [resolvable:$false] %s937_s27 }
  0x22   : > { %s939_s28 = scalar_lea.vmem %s938_s27, 8192  ;;  %p940_p11 = scmp.lt.s32.totalorder %s1115_s6, %s938_s27 }
  0x23   : > { %p935_p2 = pnand %p933_p0, %p919_p1  ;;  %p941_p4 = scmp.lt.s32.totalorder %s939_s28, %s932_s22 }
  0x25   : > { %p936_p12 = pneg %p935_p2  ;;  %p942_p5 = por %p941_p4, %p940_p11 }
  0x27   : > { %p943_p7 = pnand %p942_p5, %p936_p12 }
  0x29   : > { %946 = shalt.err (!%p943_p7)
}
  0x2a   : > { %s1016_s29 = smov 256   ;;  %s1017_s30 = smov 16  }
  0x2b   : > { %867 = dma.hbm_to_vmem [thread:$0]  (!%p1111_p13), %s1107_s4, 4096, %s1115_s6, %s1117_s8, %s1016_s29, %s1016_s29, %s1017_s30  }
  0x2c   : > { %p796_p9 = scmp.ge.s32.totalorder %s1013_s15, 1  ;;  %p157_p1 = scmp.lt.s32.totalorder %s1013_s15, 3 }
  0x2e   : > { %p158_p3 = pnand %p796_p9, %p157_p1 }
  0x30   : > { %161 = sbr.rel (%p158_p3) target bundleno = 857 (0x359), region = 32 }
  0x37   : > { %s1148_s5 = sand.u32 1, %s1005_s13  }
  0x38   : > { %s797_s9 = sshll.u32 %s1148_s5, 8  ;;  %s164_s10 = scalar_lea.sflag [#allocation3], %s1148_s5 }
  0x39   : > { %s1154_s11 = scalar_lea.vmem [#allocation2], %s797_s9 }
  0x3a   : > { %992 = dma.done.wait (%p1087_p6), %s164_s10, 4096  }
  0x3b   : > { %994 = vsyncadd (%p1087_p6), %s164_s10, 4294963200  ;;  %v1161_v0 = vld [vmem:[%s1154_s11 + $0x80] sm:$0xff]  ;;  %v1164_v1 = vld [vmem:[%s1154_s11 + $0x88] sm:$0xff]  ;;  %v1018_v51 = vmov 0.0|0.0   ;;  %vm1019_vm0 = vmmov 0   ;;  %v1020_v61 = vmov 0.0  }
  0x3c   : > { %v1167_v2 = vld [vmem:[%s1154_s11] sm:$0xff]  ;;  %v248_v3 = vadd.f32 %v1164_v1, %v1161_v0  ;;  %v1172_v4 = vld [vmem:[%s1154_s11 + $0x8] sm:$0xff]  ;;  %v1175_v5 = vld [vmem:[%s1154_s11 + $0x90] sm:$0xff]  ;;  %848 = vmatprep.subr.bf16.mxu0 %v1018_v51  ;;  %840 = vmatprep.mubr.msk.f32.mxu0 %vm1019_vm0, %v1020_v61  ;;  %vm323_vm1 = vcmask 130112   ;;  %vm330_vm2 = vcmask 195712   ;;  %vm337_vm3 = vcmask 261312  }
  0x3d   : > { %v1178_v6 = vld [vmem:[%s1154_s11 + $0x98] sm:$0xff]  ;;  %v224_v7 = vadd.f32 %v1172_v4, %v1167_v2  ;;  %v1183_v8 = vld [vmem:[%s1154_s11 + $0x10] sm:$0xff]  ;;  %v1193_v12 = vld [vmem:[%s1154_s11 + $0xa0] sm:$0xff]  ;;  %843 = vmatprep.subr.mxu1 %v1020_v61  ;;  %845 = vmatprep.mubr.msk.f32.mxu1 %vm1019_vm0, %v1020_v61  ;;  %vm344_vm4 = vcmask 326912   ;;  %vm351_vm5 = vcmask 392512   ;;  %vm358_vm6 = vcmask 458112  }
  0x3e   : > { %v1186_v9 = vld [vmem:[%s1154_s11 + $0x18] sm:$0xff]  ;;  %249 = vadd.xlane.f32.xlu1 %v248_v3  ;;  %v251_v10 = vadd.f32 %v1178_v6, %v1175_v5  ;;  %v1196_v13 = vld [vmem:[%s1154_s11 + $0xa8] sm:$0xff]  ;;  %v1199_v14 = vld [vmem:[%s1154_s11 + $0x20] sm:$0xff]  ;;  %vm365_vm7 = vcmask 523712   ;;  %vm406_vm8 = vcmask 1041409   ;;  %vm408_vm9 = vcmask 523264  }
  0x3f   : > { %225 = vadd.xlane.f32.xlu0 %v224_v7  ;;  %v227_v11 = vadd.f32 %v1186_v9, %v1183_v8  ;;  %v1202_v15 = vld [vmem:[%s1154_s11 + $0x28] sm:$0xff]  ;;  %v254_v16 = vadd.f32 %v1196_v13, %v1193_v12  ;;  %v1209_v18 = vld [vmem:[%s1154_s11 + $0xb0] sm:$0xff]  ;;  %v1212_v19 = vld [vmem:[%s1154_s11 + $0xb8] sm:$0xff]  ;;  %vm487_vm10 = vcmask 1043456   ;;  %vm483_vm11 = vcmask 31744   ;;  %s1345_s6 = scalar_lea.vmem [#allocation5], %s797_s9 }
  0x40   : > { %v230_v17 = vadd.f32 %v1202_v15, %v1199_v14  ;;  %1475 = vst [vmem:[#allocation8_spill] sm:$0xff] %v1212_v19  ;;  %v1215_v20 = vld [vmem:[%s1154_s11 + $0x30] sm:$0xff]  ;;  %v1218_v21 = vld [vmem:[%s1154_s11 + $0x38] sm:$0xff]  ;;  %v257_v22 = vadd.f32 %v1212_v19, %v1209_v18  ;;  %v1225_v24 = vld [vmem:[%s1154_s11 + $0xc0] sm:$0xff]  ;;  %s812_s9 = sshll.u32 %s1065_s16, 12  ;;  %s716_s7 = sshll.u32 %s1345_s6, 4  ;;  %s1410_s7 = int_to_ptr.vmem [resolvable:$true] %s716_s7 }
  0x41   : > { %v233_v23 = vadd.f32 %v1218_v21, %v1215_v20  ;;  %v1228_v25 = vld [vmem:[%s1154_s11 + $0xc8] sm:$0xff]  ;;  %v1231_v26 = vld [vmem:[%s1154_s11 + $0x40] sm:$0xff]  ;;  %v1241_v30 = vld [vmem:[%s1154_s11 + $0xd0] sm:$0xff]  ;;  %s1408_s19 = scalar_lea.hbm %s1461_s3, %s812_s9  ;;  %s702_s16 = scalar_lea.sflag [#allocation4], %s1148_s5 }
  0x42   : > { %252 = vadd.xlane.f32.xlu1 %v251_v10  ;;  %v1234_v27 = vld [vmem:[%s1154_s11 + $0x48] sm:$0xff]  ;;  %v260_v28 = vadd.f32 %v1228_v25, %v1225_v24  ;;  %1476 = vst [vmem:[#allocation9_spill] sm:$0xff] %v1241_v30  ;;  %v1244_v31 = vld [vmem:[%s1154_s11 + $0xd8] sm:$0xff]  ;;  %v1247_v32 = vld [vmem:[%s1154_s11 + $0x50] sm:$0xff]  ;;  %v312_v10 = vlaneseq  ;;  %s947_s20 = scalar_lea.vmem %s1410_s7, 4096  ;;  %p1489_p11 = scmp.ne.s32.totalorder %s1472_s24, 0 }
  0x43   : > { %228 = vadd.xlane.f32.xlu0 %v227_v11  ;;  %v236_v29 = vadd.f32 %v1234_v27, %v1231_v26  ;;  %1477 = vst [vmem:[#allocation10_spill] sm:$0xff] %v1244_v31  ;;  %v1250_v33 = vld [vmem:[%s1154_s11 + $0x58] sm:$0xff]  ;;  %v263_v34 = vadd.f32 %v1244_v31, %v1241_v30  ;;  %v1257_v36 = vld [vmem:[%s1154_s11 + $0xe0] sm:$0xff]  ;;  %v1260_v37 = vld [vmem:[%s1154_s11 + $0xe8] sm:$0xff]  ;;  %p948_p6 = scmp.ne.s32.totalorder %s1410_s7, %s947_s20  ;;  %s1021_s22 = smov [#allocation5]  }
  0x44   : > { %v239_v35 = vadd.f32 %v1250_v33, %v1247_v32  ;;  %1478 = vst [vmem:[#allocation11_spill] sm:$0xff] %v1257_v36  ;;  %1479 = vst [vmem:[#allocation12_spill] sm:$0xff] %v1260_v37  ;;  %v1263_v38 = vld [vmem:[%s1154_s11 + $0x60] sm:$0xff]  ;;  %v1266_v39 = vld [vmem:[%s1154_s11 + $0x68] sm:$0xff]  ;;  %v266_v40 = vadd.f32 %v1260_v37, %v1257_v36  ;;  %s951_s26 = sshll.u32 %s1021_s22, 4  ;;  %s952_s26 = int_to_ptr.vmem [resolvable:$false] %s951_s26 }
  0x45   : > { %v242_v41 = vadd.f32 %v1266_v39, %v1263_v38  ;;  %v1273_v42 = vld [vmem:[%s1154_s11 + $0xf0] sm:$0xff]  ;;  %v1276_v43 = vld [vmem:[%s1154_s11 + $0xf8] sm:$0xff]  ;;  %v288_v48 = vld [vmem:[%s1459_s1] sm:$0xff]  ;;  %p949_p12 = pnand %p948_p6, %p1489_p11  ;;  %s953_s27 = scalar_lea.vmem %s952_s26, 8192 }
  0x46   : > { %255 = vadd.xlane.f32.xlu1 %v254_v16  ;;  %1480 = vst [vmem:[#allocation13_spill] sm:$0xff] %v1273_v42  ;;  %1481 = vst [vmem:[#allocation14_spill] sm:$0xff] %v1276_v43  ;;  %v1279_v44 = vld [vmem:[%s1154_s11 + $0x70] sm:$0xff]  ;;  %v1282_v45 = vld [vmem:[%s1154_s11 + $0x78] sm:$0xff]  ;;  %v269_v46 = vadd.f32 %v1276_v43, %v1273_v42  ;;  %p954_p8 = scmp.lt.s32.totalorder %s1410_s7, %s952_s26  ;;  %p955_p10 = scmp.lt.s32.totalorder %s953_s27, %s947_s20 }
  0x47   : > { %231 = vadd.xlane.f32.xlu0 %v230_v17  ;;  %v245_v47 = vadd.f32 %v1282_v45, %v1279_v44  ;;  %v289_v49 = vld [vmem:[%s1459_s1 + $0x8] sm:$0xff]  ;;  %v290_v52 = vld [vmem:[%s1459_s1 + $0x10] sm:$0xff]  ;;  %v291_v53 = vld [vmem:[%s1459_s1 + $0x18] sm:$0xff]  ;;  %v313_v17 = vand.u32 127, %v312_v10  ;;  %p950_p13 = pneg %p949_p12 }
  0x48   : > { %v849_v50 = vpack.c.bf16 %v289_v49, %v288_v48  ;;  %v852_v54 = vpack.c.bf16 %v291_v53, %v290_v52  ;;  %v292_v55 = vld [vmem:[%s1459_s1 + $0x20] sm:$0xff]  ;;  %v293_v56 = vld [vmem:[%s1459_s1 + $0x28] sm:$0xff]  ;;  %v294_v58 = vld [vmem:[%s1459_s1 + $0x30] sm:$0xff]  ;;  %p956_p0 = por %p955_p10, %p954_p8 }
  0x49   : > { %v855_v57 = vpack.c.bf16 %v293_v56, %v292_v55  ;;  %v295_v59 = vld [vmem:[%s1459_s1 + $0x38] sm:$0xff] }
  0x4a   : > { %258 = vadd.xlane.f32.xlu1 %v257_v22  ;;  %850 = vmatpush3.bf16.msra.mxu0 %v849_v50  ;;  %v858_v60 = vpack.c.bf16 %v295_v59, %v294_v58  ;;  %p957_p2 = pnand %p956_p0, %p950_p13 }
  0x4b   : > { %234 = vadd.xlane.f32.xlu0 %v233_v23  ;;  %851 = vmatprep.subr.bf16.mxu0 %v1018_v51  ;;  %v1312_v23 = vshrl.u32 %v312_v10, 7 }
  0x4e   : > { %261 = vadd.xlane.f32.xlu1 %v260_v28  ;;  %853 = vmatpush3.bf16.msra.mxu0 %v852_v54 }
  0x4f   : > { %237 = vadd.xlane.f32.xlu0 %v236_v29  ;;  %854 = vmatprep.subr.bf16.mxu0 %v1018_v51  ;;  %v318_v29 = vadd.s32 4294967288, %v313_v17 }
  0x51   : > { %v321_v49 = vsub.s32 %v318_v29, %v1312_v23 }
  0x52   : > { %264 = vadd.xlane.f32.xlu1 %v263_v34  ;;  %856 = vmatpush3.bf16.msra.mxu0 %v855_v57  ;;  %v325_v34 = vadd.s32 4294967280, %v313_v17 }
  0x53   : > { %240 = vadd.xlane.f32.xlu0 %v239_v35  ;;  %857 = vmatprep.subr.bf16.mxu0 %v1018_v51  ;;  %v332_v35 = vadd.s32 4294967272, %v313_v17  ;;  %v353_v51 = vadd.s32 4294967248, %v313_v17 }
  0x54   : > { %v328_v50 = vsub.s32 %v325_v34, %v1312_v23 }
  0x55   : > { %v335_v53 = vsub.s32 %v332_v35, %v1312_v23 }
  0x56   : > { %267 = vadd.xlane.f32.xlu1 %v266_v40  ;;  %859 = vmatpush3.bf16.msra.mxu0 %v858_v60  ;;  %v339_v40 = vadd.s32 4294967264, %v313_v17 }
  0x57   : > { %243 = vadd.xlane.f32.xlu0 %v242_v41 }
  0x58   : > { %v342_v54 = vsub.s32 %v339_v40, %v1312_v23  ;;  %v360_v40 = vadd.s32 4294967240, %v313_v17 }
  0x5a   : > { %270 = vadd.xlane.f32.xlu1 %v269_v46  ;;  %v346_v46 = vadd.s32 4294967256, %v313_v17 }
  0x5b   : > { %246 = vadd.xlane.f32.xlu0 %v245_v47  ;;  %v316_v47 = vsub.s32 %v313_v17, %v1312_v23  ;;  %v363_v17 = vsub.s32 %v360_v40, %v1312_v23 }
  0x5c   : > { %v349_v57 = vsub.s32 %v346_v46, %v1312_v23 }
  0xcb   : > { %v250_v62 = vpop.xlane.xlu1 %249 }
  0xcc   : > { %v226_v63 = vpop.xlane.xlu0 %225  ;;  %v280_v59 = vmul.f32 0.00390625, %v250_v62 }
  0xcd   : > { %v272_v29 = vmul.f32 0.00390625, %v226_v63 }
  0xce   : > { %v370_v37 = vrot.slane %v280_v59, %v316_v47 }
  0xcf   : > { %v253_v3 = vpop.xlane.xlu1 %252  ;;  %v317_v19 = vrot.slane %v272_v29, %v316_v47 }
  0xd0   : > { %v229_v7 = vpop.xlane.xlu0 %228  ;;  %v281_v52 = vmul.f32 0.00390625, %v253_v3  ;;  %v356_v3 = vsub.s32 %v353_v51, %v1312_v23 }
  0xd1   : > { %v273_v55 = vmul.f32 0.00390625, %v229_v7 }
  0xd2   : > { %v374_v35 = vrot.slane %v281_v52, %v321_v49 }
  0xd3   : > { %v256_v11 = vpop.xlane.xlu1 %255  ;;  %v322_v7 = vrot.slane %v273_v55, %v321_v49 }
  0xd4   : > { %v232_v16 = vpop.xlane.xlu0 %231  ;;  %v282_v56 = vmul.f32 0.00390625, %v256_v11  ;;  %v375_v51 = vsel %vm323_vm1, %v374_v35, %v370_v37  ;;  %v482_v35 = vld [vmem:[%s1460_s2] sm:$0xf] }
  0xd5   : > { %v274_v60 = vmul.f32 0.00390625, %v232_v16  ;;  %v324_v49 = vsel %vm323_vm1, %v322_v7, %v317_v19  ;;  %844 = vmatpush3.msk.msra.mxu1 %vm487_vm10, %v482_v35 }
  0xd6   : > { %v379_v11 = vrot.slane %v282_v56, %v328_v50 }
  0xd7   : > { %v259_v22 = vpop.xlane.xlu1 %258  ;;  %v329_v62 = vrot.slane %v274_v60, %v328_v50 }
  0xd8   : > { %v235_v28 = vpop.xlane.xlu0 %234  ;;  %v283_v61 = vmul.f32 0.00390625, %v259_v22  ;;  %v380_v55 = vsel %vm330_vm2, %v379_v11, %v375_v51 }
  0xd9   : > { %v275_v34 = vmul.f32 0.00390625, %v235_v28  ;;  %v331_v59 = vsel %vm330_vm2, %v329_v62, %v324_v49 }
  0xda   : > { %v384_v16 = vrot.slane %v283_v61, %v335_v53 }
  0xdb   : > { %v262_v41 = vpop.xlane.xlu1 %261  ;;  %v336_v63 = vrot.slane %v275_v34, %v335_v53 }
  0xdc   : > { %v238_v48 = vpop.xlane.xlu0 %237  ;;  %v284_v43 = vmul.f32 0.00390625, %v262_v41  ;;  %v385_v47 = vsel %vm337_vm3, %v384_v16, %v380_v55 }
  0xdd   : > { %v276_v42 = vmul.f32 0.00390625, %v238_v48  ;;  %v338_v37 = vsel %vm337_vm3, %v336_v63, %v331_v59 }
  0xde   : > { %v389_v28 = vrot.slane %v284_v43, %v342_v54 }
  0xdf   : > { %v265_v58 = vpop.xlane.xlu1 %264  ;;  %v343_v52 = vrot.slane %v276_v42, %v342_v54 }
  0xe0   : > { %v241_v10 = vpop.xlane.xlu0 %240  ;;  %v285_v31 = vmul.f32 0.00390625, %v265_v58 }
  0xe1   : > { %v277_v30 = vmul.f32 0.00390625, %v241_v10  ;;  %v345_v19 = vsel %vm344_vm4, %v343_v52, %v338_v37  ;;  %v604_v52 = vsub.s32 1, %v1312_v23 }
  0xe2   : > { %v394_v48 = vrot.slane %v285_v31, %v349_v57  ;;  %v390_v31 = vsel %vm344_vm4, %v389_v28, %v385_v47  ;;  %v569_v28 = vsub.s32 0, %v1312_v23 }
  0xe3   : > { %v268_v46 = vpop.xlane.xlu1 %267  ;;  %v350_v56 = vrot.slane %v277_v30, %v349_v57 }
  0xe4   : > { %v286_v22 = vmul.f32 0.00390625, %v268_v46  ;;  %v244_v36 = vpop.xlane.xlu0 %243  ;;  %v395_v54 = vsel %vm351_vm5, %v394_v48, %v390_v31 }
  0xe5   : > { %v278_v41 = vmul.f32 0.00390625, %v244_v36  ;;  %v352_v57 = vsel %vm351_vm5, %v350_v56, %v345_v19 }
  0xe6   : > { %v399_v58 = vrot.slane %v286_v22, %v356_v3 }
  0xe7   : > { %v271_v50 = vpop.xlane.xlu1 %270  ;;  %v357_v53 = vrot.slane %v278_v41, %v356_v3 }
  0xe8   : > { %v287_v43 = vmul.f32 0.00390625, %v271_v50  ;;  %v247_v36 = vpop.xlane.xlu0 %246  ;;  %v400_v60 = vsel %vm358_vm6, %v399_v58, %v395_v54 }
  0xe9   : > { %v279_v42 = vmul.f32 0.00390625, %v247_v36  ;;  %v359_v10 = vsel %vm358_vm6, %v357_v53, %v352_v57  ;;  %v1482_v57 = vld [vmem:[#allocation8_spill] sm:$0xff] }
  0xea   : > { %v404_v30 = vrot.slane %v287_v43, %v363_v17 }
  0xeb   : > { %v364_v61 = vrot.slane %v279_v42, %v363_v17 }
  0xec   : > { %v405_v29 = vsel %vm365_vm7, %v404_v30, %v400_v60 }
  0xed   : > { %v366_v34 = vsel %vm365_vm7, %v364_v61, %v359_v10  ;;  %v1484_v10 = vld [vmem:[#allocation12_spill] sm:$0xff] }
  0xee   : > { %v407_v3 = vsel %vm406_vm8, %v405_v29, %v366_v34  ;;  %v1485_v29 = vld [vmem:[#allocation9_spill] sm:$0xff] }
  0xef   : > { %841 = vmatmul.mubr.msk.f32.vlgmr.msra.gmra.mrb[0].mxu0 %vm408_vm9, %v407_v3  ;;  %v1486_v3 = vld [vmem:[#allocation10_spill] sm:$0xff] }
 0x1c2   : > { %v477_v40 = vpop.f32.mrb[0].mxu0 }
 0x1c3   : > { %v481_v7 = vmax.f32 %v477_v40, 0.0  ;;  %v842_v11 = vpop.f32.mrb[1].mxu0  ;;  %v1487_v40 = vld [vmem:[#allocation13_spill] sm:$0xff] }
 0x1c4   : > { %v1488_v11 = vld [vmem:[#allocation14_spill] sm:$0xff] }
 0x1c5   : > { %846 = vmatmul.mubr.msk.f32.vlgmr.msra.gmra.mrb[0].mxu1 %vm483_vm11, %v481_v7 }
 0x298   : > { %v557_v46 = vpop.f32.mrb[0].mxu1 }
 0x299   : > { %v802_v62 = vmul.f32 -1.442695, %v557_v46  ;;  %v847_v16 = vpop.f32.mrb[1].mxu1 }
 0x29b   : > { %913 = vpow2.f32 %v802_v62 }
 0x2a5   : > { %v914_v22 = vpop.eup %913 }
 0x2a6   : > { %v564_v63 = vadd.f32 1.0, %v914_v22 }
 0x2a8   : > { %915 = vrcp.f32 %v564_v63 }
 0x2b2   : > { %v916_v41 = vpop.eup %915 }
 0x2b3   : > { %v570_v51 = vrot.slane %v916_v41, %v569_v28  ;;  %v605_v48 = vrot.slane %v916_v41, %v604_v52 }
 0x2b5   : > { %576 = vbcast.lane.b32.xlu1 %v570_v51, 264  ;;  %572 = vbcast.lane.b32.xlu0 %v570_v51, 256 }
 0x2b9   : > { %580 = vbcast.lane.b32.xlu1 %v570_v51, 272  ;;  %588 = vbcast.lane.b32.xlu0 %v570_v51, 288 }
 0x2bd   : > { %584 = vbcast.lane.b32.xlu1 %v570_v51, 280  ;;  %596 = vbcast.lane.b32.xlu0 %v570_v51, 304 }
 0x2c1   : > { %592 = vbcast.lane.b32.xlu1 %v570_v51, 296  ;;  %607 = vbcast.lane.b32.xlu0 %v605_v48, 256 }
 0x2c5   : > { %600 = vbcast.lane.b32.xlu1 %v570_v51, 312  ;;  %615 = vbcast.lane.b32.xlu0 %v605_v48, 272 }
 0x2c9   : > { %611 = vbcast.lane.b32.xlu1 %v605_v48, 264  ;;  %623 = vbcast.lane.b32.xlu0 %v605_v48, 288 }
 0x2cd   : > { %619 = vbcast.lane.b32.xlu1 %v605_v48, 280  ;;  %631 = vbcast.lane.b32.xlu0 %v605_v48, 304 }
 0x2d1   : > { %627 = vbcast.lane.b32.xlu1 %v605_v48, 296 }
 0x2d5   : > { %635 = vbcast.lane.b32.xlu1 %v605_v48, 312 }
 0x327   : > { %v577_v17 = vpop.permute.xlu1 %576  ;;  %v573_v49 = vpop.permute.xlu0 %572 }
 0x328   : > { %v639_v55 = vmul.f32 %v577_v17, %v1183_v8  ;;  %v640_v23 = vmul.f32 %v577_v17, %v1186_v9  ;;  %v637_v56 = vmul.f32 %v573_v49, %v1167_v2  ;;  %v638_v58 = vmul.f32 %v573_v49, %v1172_v4 }
 0x32a   : > { %671 = vst [vmem:[%s1345_s6 + $0x10] sm:$0xff] %v639_v55  ;;  %672 = vst [vmem:[%s1345_s6 + $0x18] sm:$0xff] %v640_v23 }
 0x32b   : > { %669 = vst [vmem:[%s1345_s6] sm:$0xff] %v637_v56  ;;  %670 = vst [vmem:[%s1345_s6 + $0x8] sm:$0xff] %v638_v58  ;;  %v581_v8 = vpop.permute.xlu1 %580  ;;  %v589_v2 = vpop.permute.xlu0 %588 }
 0x32c   : > { %v641_v4 = vmul.f32 %v581_v8, %v1199_v14  ;;  %v642_v9 = vmul.f32 %v581_v8, %v1202_v15  ;;  %v645_v50 = vmul.f32 %v589_v2, %v1231_v26  ;;  %v646_v59 = vmul.f32 %v589_v2, %v1234_v27 }
 0x32e   : > { %673 = vst [vmem:[%s1345_s6 + $0x20] sm:$0xff] %v641_v4  ;;  %674 = vst [vmem:[%s1345_s6 + $0x28] sm:$0xff] %v642_v9 }
 0x32f   : > { %677 = vst [vmem:[%s1345_s6 + $0x40] sm:$0xff] %v645_v50  ;;  %678 = vst [vmem:[%s1345_s6 + $0x48] sm:$0xff] %v646_v59  ;;  %v585_v47 = vpop.permute.xlu1 %584  ;;  %v597_v53 = vpop.permute.xlu0 %596 }
 0x330   : > { %v643_v43 = vmul.f32 %v585_v47, %v1215_v20  ;;  %v644_v14 = vmul.f32 %v585_v47, %v1218_v21  ;;  %v649_v15 = vmul.f32 %v597_v53, %v1263_v38  ;;  %v650_v26 = vmul.f32 %v597_v53, %v1266_v39 }
 0x332   : > { %675 = vst [vmem:[%s1345_s6 + $0x30] sm:$0xff] %v643_v43  ;;  %676 = vst [vmem:[%s1345_s6 + $0x38] sm:$0xff] %v644_v14 }
 0x333   : > { %681 = vst [vmem:[%s1345_s6 + $0x60] sm:$0xff] %v649_v15  ;;  %682 = vst [vmem:[%s1345_s6 + $0x68] sm:$0xff] %v650_v26  ;;  %v593_v27 = vpop.permute.xlu1 %592  ;;  %v608_v36 = vpop.permute.xlu0 %607 }
 0x334   : > { %v647_v37 = vmul.f32 %v593_v27, %v1247_v32  ;;  %v648_v20 = vmul.f32 %v593_v27, %v1250_v33  ;;  %v653_v21 = vmul.f32 %v608_v36, %v1161_v0  ;;  %v654_v38 = vmul.f32 %v608_v36, %v1164_v1 }
 0x336   : > { %679 = vst [vmem:[%s1345_s6 + $0x50] sm:$0xff] %v647_v37  ;;  %680 = vst [vmem:[%s1345_s6 + $0x58] sm:$0xff] %v648_v20 }
 0x337   : > { %685 = vst [vmem:[%s1345_s6 + $0x80] sm:$0xff] %v653_v21  ;;  %686 = vst [vmem:[%s1345_s6 + $0x88] sm:$0xff] %v654_v38  ;;  %v601_v39 = vpop.permute.xlu1 %600  ;;  %v616_v31 = vpop.permute.xlu0 %615 }
 0x338   : > { %v651_v42 = vmul.f32 %v601_v39, %v1279_v44  ;;  %v652_v32 = vmul.f32 %v601_v39, %v1282_v45  ;;  %v657_v33 = vmul.f32 %v616_v31, %v1193_v12  ;;  %v658_v0 = vmul.f32 %v616_v31, %v1196_v13 }
 0x33a   : > { %683 = vst [vmem:[%s1345_s6 + $0x70] sm:$0xff] %v651_v42  ;;  %684 = vst [vmem:[%s1345_s6 + $0x78] sm:$0xff] %v652_v32 }
 0x33b   : > { %689 = vst [vmem:[%s1345_s6 + $0xa0] sm:$0xff] %v657_v33  ;;  %690 = vst [vmem:[%s1345_s6 + $0xa8] sm:$0xff] %v658_v0  ;;  %v612_v1 = vpop.permute.xlu1 %611  ;;  %v624_v19 = vpop.permute.xlu0 %623 }
 0x33c   : > { %v655_v54 = vmul.f32 %v612_v1, %v1175_v5  ;;  %v656_v44 = vmul.f32 %v612_v1, %v1178_v6  ;;  %v661_v45 = vmul.f32 %v624_v19, %v1225_v24  ;;  %v662_v12 = vmul.f32 %v624_v19, %v1228_v25  ;;  %v1483_v6 = vld [vmem:[#allocation11_spill] sm:$0xff] }
 0x33e   : > { %687 = vst [vmem:[%s1345_s6 + $0x90] sm:$0xff] %v655_v54  ;;  %688 = vst [vmem:[%s1345_s6 + $0x98] sm:$0xff] %v656_v44 }
 0x33f   : > { %693 = vst [vmem:[%s1345_s6 + $0xc0] sm:$0xff] %v661_v45  ;;  %694 = vst [vmem:[%s1345_s6 + $0xc8] sm:$0xff] %v662_v12  ;;  %v620_v13 = vpop.permute.xlu1 %619  ;;  %v632_v30 = vpop.permute.xlu0 %631 }
 0x340   : > { %v659_v5 = vmul.f32 %v620_v13, %v1209_v18  ;;  %v660_v60 = vmul.f32 %v620_v13, %v1482_v57  ;;  %v665_v61 = vmul.f32 %v632_v30, %v1483_v6  ;;  %v666_v24 = vmul.f32 %v632_v30, %v1484_v10 }
 0x342   : > { %691 = vst [vmem:[%s1345_s6 + $0xb0] sm:$0xff] %v659_v5  ;;  %692 = vst [vmem:[%s1345_s6 + $0xb8] sm:$0xff] %v660_v60 }
 0x343   : > { %697 = vst [vmem:[%s1345_s6 + $0xe0] sm:$0xff] %v665_v61  ;;  %698 = vst [vmem:[%s1345_s6 + $0xe8] sm:$0xff] %v666_v24  ;;  %v628_v25 = vpop.permute.xlu1 %627 }
 0x344   : > { %v663_v34 = vmul.f32 %v628_v25, %v1485_v29  ;;  %v664_v35 = vmul.f32 %v628_v25, %v1486_v3 }
 0x346   : > { %695 = vst [vmem:[%s1345_s6 + $0xd0] sm:$0xff] %v663_v34  ;;  %696 = vst [vmem:[%s1345_s6 + $0xd8] sm:$0xff] %v664_v35 }
 0x347   : > { %v636_v18 = vpop.permute.xlu1 %635 }
 0x348   : > { %v667_v7 = vmul.f32 %v636_v18, %v1487_v40  ;;  %v668_v46 = vmul.f32 %v636_v18, %v1488_v11 }
 0x34a   : > { %699 = vst [vmem:[%s1345_s6 + $0xf0] sm:$0xff] %v667_v7  ;;  %700 = vst [vmem:[%s1345_s6 + $0xf8] sm:$0xff] %v668_v46 }
 0x34b   : > { %960 = shalt.err (!%p957_p2)
}
 0x34c   : > { %s961_s28 = scalar_lea.hbm %s1408_s19, 4096  ;;  %s965_s10 = scalar_lea.hbm %s1461_s3, 8192 }
 0x34d   : > { %p962_p4 = scmp.ne.s32.totalorder %s1408_s19, %s961_s28  ;;  %p966_p9 = scmp.lt.u32.totalorder %s1408_s19, %s1461_s3 }
 0x34e   : > { %p967_p1 = scmp.lt.u32.totalorder %s965_s10, %s961_s28  ;;  %p969_p6 = scmp.lt.u32.totalorder %s961_s28, %s1408_s19 }
 0x34f   : > { %p963_p5 = pnand %p962_p4, %p1489_p11 }
 0x350   : > { %p968_p3 = por %p967_p1, %p966_p9 }
 0x351   : > { %p964_p7 = pneg %p963_p5 }
 0x352   : > { %p970_p12 = por %p969_p6, %p968_p3 }
 0x354   : > { %p971_p13 = pnand %p970_p12, %p964_p7 }
 0x356   : > { %974 = shalt.err (!%p971_p13)
}
 0x357   : > { %s1022_s4 = smov 256   ;;  %s1023_s6 = smov 16  }
 0x358   : > { %862 = dma.vmem_to_hbm [thread:$0]  (%p1489_p11), %s1410_s7, 4096, %s1408_s19, %s702_s16, %s1022_s4, %s1022_s4, %s1023_s6  }
 0x359 PF: > { %s731_s9 = sand.u32 1, %s1001_s12   ;;  %p1490_p8 = scmp.ne.s32.totalorder %s1473_s25, 0 }
 0x35a   : > { %p1491_p10 = scmp.ge.s32.totalorder %s1013_s15, 2  ;;  %s732_s8 = scalar_lea.sflag [#allocation4], %s731_s9 }
 0x35c   : > { %p869_p0 = pnand %p1491_p10, %p1490_p8 }
 0x35e   : > { %996 = dma.done.wait (!%p869_p0), %s732_s8, 4096  }
 0x35f   : > { %998 = vsyncadd (!%p869_p0), %s732_s8, 4294963200  ;;  %p16_p2 = scmp.ge.s32.totalorder %s1069_s18, 4   ;;  %s1492_s12 = smov %s1005_s13 }
 0x360   : > { %s1493_s13 = smov %s1009_s14  ;;  %s1494_s14 = smov %s1081_s21 }
 0x361   : > { %s1495_s15 = smov %s1069_s18  ;;  %18 = sbr.rel (!%p16_p2) target bundleno = 5 (0x5), region = 77 }
 0x368   :  { %737 = vsyncpa [#allocation3], 1 }
 0x369   :  { %739 = vsyncpa [#allocation3 + $0x1], 1 }
 0x36a   :  { %740 = vsyncpa [#allocation4], 1 }
 0x36b   :  { %742 = vsyncpa [#allocation4 + $0x1], 1 }

</bundles_post_ra>
